<compile_context>
chip_gen: v7x
topology: tpu7x:2x2x1
jax: 0.10.0
libtpu: 0.0.40
codegen_flags: <defaults>
</compile_context>

<pallas_src>
import functools

import jax
import jax.numpy as jnp
import numpy as np
from jax.experimental import pallas as pl
from jax.experimental.pallas import tpu as pltpu


def _fpsa_kernel(z_ref, kt_ref, v_ref, wq_ref, bq_ref, o_ref, out_acc,
                 *, num_heads, normalize, causal, tq, tk):
    """One (batch, query-tile) step: all heads fused, lane-dense I/O."""
    qt = pl.program_id(1)
    C = wq_ref.shape[0]
    H = num_heads
    D = C // H
    N = kt_ref.shape[3]

    # ---- Q projection for this tile (scale & 1/temperature already folded into
    #      wq/bq in the wrapper).  bf16 MXU operands, fp32 accumulation. ----
    q = jnp.dot(z_ref[0], wq_ref[...], preferred_element_type=jnp.float32)
    q = (q + bq_ref[...]).astype(jnp.bfloat16)                        # (tq, C)

    if causal:
        row0 = qt * tq
        rows = row0 + jax.lax.broadcasted_iota(jnp.int32, (tq, tk), 0)

    # ---- Per-head attention (static unroll over the small head count). ----
    for h in range(H):
        lo = h * D
        q_h = q[:, lo:lo + D]                                         # (tq, D) bf16

        if not causal:
            # K is pre-transposed (D, N): plain matmul, no in-kernel transpose.
            s = jnp.dot(q_h, kt_ref[0, h],
                        preferred_element_type=jnp.float32)           # (tq, N) f32
            m = jnp.max(s, axis=-1, keepdims=True)
            e = jnp.exp(s - m)
            p = (e * pl.reciprocal(jnp.sum(e, axis=-1, keepdims=True),
                                   approx=True)).astype(jnp.bfloat16)
            out_h = jnp.dot(p, v_ref[0, h],
                            preferred_element_type=jnp.float32)       # (tq, D) f32
        else:
            # Online softmax over KV tiles; only the (qt + 1) tiles that contain
            # any unmasked column are visited (tiles past the diagonal skipped).
            def body(j, carry):
                m_i, l_i, acc = carry
                col0 = pl.multiple_of(j * tk, tk)
                k_t = kt_ref[0, h, :, pl.ds(col0, tk)]                # (D, tk)
                v_t = v_ref[0, h, pl.ds(col0, tk), :]                 # (tk, D)
                s = jnp.dot(q_h, k_t, preferred_element_type=jnp.float32)
                cols = col0 + jax.lax.broadcasted_iota(jnp.int32, (tq, tk), 1)
                s = jnp.where(cols > rows, -jnp.inf, s)
                m_new = jnp.maximum(m_i, jnp.max(s, axis=-1, keepdims=True))
                alpha = jnp.exp(m_i - m_new)
                e = jnp.exp(s - m_new)
                l_new = alpha * l_i + jnp.sum(e, axis=-1, keepdims=True)
                acc_new = alpha * acc + jnp.dot(e.astype(jnp.bfloat16), v_t,
                                                preferred_element_type=jnp.float32)
                return m_new, l_new, acc_new

            init = (jnp.full((tq, 1), -jnp.inf, jnp.float32),
                    jnp.zeros((tq, 1), jnp.float32),
                    jnp.zeros((tq, D), jnp.float32))
            _, l_f, acc = jax.lax.fori_loop(0, qt + 1, body, init)
            out_h = acc * pl.reciprocal(l_f, approx=True)

        # Accumulate into the fp32 scratch slab (bounds vreg pressure; avoids a
        # lane-dim concatenate of sub-128-wide pieces).
        out_acc[:, lo:lo + D] = out_h

    out = out_acc[...]
    if normalize:
        out = jnp.tanh(out)
    o_ref[0] = out.astype(o_ref.dtype)                                # lane-dense store


def fixed_point_self_attention_step(z_k, x, W_qkv, b_qkv, temperature, *,
                                    num_heads, normalize=True, causal=False):
    """Pallas forward of FixedPointSelfAttentionStep.

    z_k, x:       (B, N, C) float32
    W_qkv, b_qkv: fused qkv Linear parameters, shapes (3C, C) and (3C,)
    temperature:  (num_heads,)
    """
    B, N, C = z_k.shape
    H = num_heads
    D = C // H
    assert H * D == C, "embed_dim must be divisible by num_heads"
    f32 = jnp.float32

    # ---- Fold D**-0.5 / temperature into Wq & bq (fp32 math, then bf16 cast). ----
    scale_vec = ((D ** -0.5) /
                 jnp.repeat(temperature.astype(f32), D)).reshape(1, C)         # (1, C)
    wq = (W_qkv[0:C, :].astype(f32).T * scale_vec).astype(jnp.bfloat16)        # (C, C)
    bq = (b_qkv[0:C].astype(f32) * scale_vec.reshape(C)).reshape(1, C)         # (1, C) f32

    # ---- K projection precomputed outside the kernel (plain XLA matmul),
    #      stored head-major & pre-transposed: (B, H, D, N) bf16. ----
    k = z_k.astype(f32) @ W_qkv[C:2 * C, :].astype(f32).T + b_qkv[C:2 * C].astype(f32)
    k_heads = k.reshape(B, N, H, D).transpose(0, 2, 3, 1).astype(jnp.bfloat16)

    # ---- Values head-major (B, H, N, D) bf16; queries' z input in bf16. ----
    v_heads = x.reshape(B, N, H, D).transpose(0, 2, 1, 3).astype(jnp.bfloat16)
    z_bf16 = z_k.astype(jnp.bfloat16)

    # ---- Per-chip VMEM budget (leave headroom: ~51 MiB on v7x, ~102 MiB v5e/v6e). ----
    try:
        phys_vmem = getattr(pltpu.get_tpu_info(), "vmem_capacity_bytes", 64 << 20)
    except Exception:  # pragma: no cover - conservative fallback
        phys_vmem = 64 << 20
    cap = max(int(phys_vmem * 4 // 5), 32 << 20)

    def vmem_estimate(tq_):
        return (2 * tq_ * C * 2        # z tile (bf16, double-buffered)
                + 2 * N * C * 2        # K block (bf16, double-buffered)
                + 2 * N * C * 2        # V block (bf16, double-buffered)
                + 2 * C * C * 2        # Wq (bf16, double-buffered)
                + 2 * C * 4            # bq
                + 2 * tq_ * C * 4      # output tile (f32, double-buffered)
                + tq_ * C * 4          # out_acc scratch
                + 4 * tq_ * N * 4)     # per-head score/exp intermediates headroom

    # Query tile: biggest candidate that divides N and fits the per-chip budget.
    if N % 128 != 0 or N <= 256:
        tq = N
    else:
        tq = 128
        for cand in (512, 384, 256, 128):
            if cand <= N and N % cand == 0 and vmem_estimate(cand) <= cap:
                tq = cand
                break
    # TODO(synk): if vmem_estimate(128) still exceeds `cap` (huge N*C), switch to
    # flash-style KV tiling instead of keeping full K/V resident per batch.
    n_qt = N // tq
    vmem_limit = int(min(max(vmem_estimate(tq) + (2 << 20), 32 << 20), cap))

    kernel = functools.partial(_fpsa_kernel, num_heads=H, normalize=normalize,
                               causal=causal, tq=tq, tk=tq)

    return pl.pallas_call(
        kernel,
        out_shape=jax.ShapeDtypeStruct((B, N, C), z_k.dtype),
        grid_spec=pltpu.PrefetchScalarGridSpec(
            num_scalar_prefetch=0,
            grid=(B, n_qt),
            in_specs=[
                pl.BlockSpec((1, tq, C), lambda b, qt: (b, qt, 0)),      # z (bf16)
                pl.BlockSpec((1, H, D, N), lambda b, qt: (b, 0, 0, 0)),  # K^T (bf16)
                pl.BlockSpec((1, H, N, D), lambda b, qt: (b, 0, 0, 0)),  # V (bf16)
                pl.BlockSpec((C, C), lambda b, qt: (0, 0)),              # Wq*scale
                pl.BlockSpec((1, C), lambda b, qt: (0, 0)),              # bq*scale
            ],
            out_specs=pl.BlockSpec((1, tq, C), lambda b, qt: (b, qt, 0)),
            scratch_shapes=[pltpu.VMEM((tq, C), jnp.float32)],           # head-output slab
        ),
        compiler_params=pltpu.CompilerParams(
            # Both axes independent now (K is precomputed; scratch is fully
            # rewritten each step) -> both TensorCores usable on v7x even at B=1.
            dimension_semantics=("parallel", "parallel"),
            vmem_limit_bytes=vmem_limit),
    )(z_bf16, k_heads, v_heads, wq, bq)


def _ref_forward(z_k, x, W_qkv, b_qkv, temperature, *, num_heads,
                 normalize=True, causal=False):
    """Pure-JAX (fp32) replica of the PyTorch forward, for verification."""
    B, N, C = z_k.shape
    H = num_heads
    D = C // H
    qkv = (z_k @ W_qkv.T + b_qkv).reshape(B, N, 3, H, D).transpose(2, 0, 3, 1, 4)
    q, k = qkv[0], qkv[1]
    attn = jnp.einsum('bhnd,bhmd->bhnm', q, k) * (D ** -0.5)
    attn = attn / temperature.reshape(1, H, 1, 1)
    if causal:
        mask = jnp.triu(jnp.ones((N, N), dtype=bool), k=1)
        attn = jnp.where(mask, -jnp.inf, attn)
    attn = jax.nn.softmax(attn, axis=-1)
    v = x.reshape(B, N, H, D).transpose(0, 2, 1, 3)
    out = jnp.einsum('bhnm,bhmd->bhnd', attn, v).transpose(0, 2, 1, 3).reshape(B, N, C)
    if normalize:
        out = jnp.tanh(out)
    return out


if __name__ == "__main__":
    # Small, module-consistent shapes: B=2, seq N=8, embed C=32, heads H=2 (D=16).
    B, N, C, H = 2, 8, 32, 2

    key = jax.random.PRNGKey(0)
    k_w, k_z, k_x = jax.random.split(key, 3)

    # Parameters mirroring __init__: orthogonal qkv weight, zero bias.
    W_raw = jax.random.normal(k_w, (3 * C, C), dtype=jnp.float32)
    W_qkv, _ = jnp.linalg.qr(W_raw)                 # (3C, C), orthonormal columns
    W_qkv = W_qkv.astype(jnp.float32)
    b_qkv = jnp.zeros((3 * C,), dtype=jnp.float32)
    # temperature is a learned parameter (init is ones); use non-trivial values so
    # the fold of 1/temperature into Wq is actually exercised.
    temperature = jnp.asarray([1.0 + 0.25 * h for h in range(H)], dtype=jnp.float32)

    z_k = jax.random.normal(k_z, (B, N, C), dtype=jnp.float32)
    x = jax.random.normal(k_x, (B, N, C), dtype=jnp.float32)

    for causal in (False, True):
        z_next = fixed_point_self_attention_step(
            z_k, x, W_qkv, b_qkv, temperature,
            num_heads=H, normalize=True, causal=causal)
        z_next = jax.block_until_ready(z_next)

        z_ref = _ref_forward(z_k, x, W_qkv, b_qkv, temperature,
                             num_heads=H, normalize=True, causal=causal)
        # Tolerance reflects bf16 MXU operands + EUP approx reciprocal vs fp32 ref
        # (fp32 accumulation is preserved in the kernel).
        np.testing.assert_allclose(np.asarray(z_next), np.asarray(z_ref),
                                   rtol=5e-2, atol=5e-2)

    print("KERNEL_OK")
</pallas_src>

<mosaic_0001>
module attributes {stable_mosaic.version = 11 : i64} {
  func.func @_fpsa_kernel(%arg0: i32, %arg1: i32, %arg2: memref<1x8x32xbf16, #tpu.memory_space<vmem>>, %arg3: memref<1x2x16x8xbf16, #tpu.memory_space<vmem>>, %arg4: memref<1x2x8x16xbf16, #tpu.memory_space<vmem>>, %arg5: memref<32x32xbf16, #tpu.memory_space<vmem>>, %arg6: memref<1x32xf32, #tpu.memory_space<vmem>>, %arg7: memref<1x8x32xf32, #tpu.memory_space<vmem>>, %arg8: memref<8x32xf32, #tpu.memory_space<vmem>>) attributes {dimension_semantics = [#tpu.dimension_semantics<parallel>, #tpu.dimension_semantics<parallel>], iteration_bounds = array<i64: 2, 1>, scalar_prefetch = 0 : i64, scratch_operands = 1 : i64, tpu.core_type = #tpu.core_type<tc>, window_params = [{transform_indices = @transform_0, window_bounds = array<i64: 1, 8, 32>}, {transform_indices = @transform_1, window_bounds = array<i64: 1, 2, 16, 8>}, {transform_indices = @transform_2, window_bounds = array<i64: 1, 2, 8, 16>}, {pipeline_mode = #tpu.pipeline_mode<synchronous>, transform_indices = @transform_3, window_bounds = array<i64: 32, 32>}, {pipeline_mode = #tpu.pipeline_mode<synchronous>, transform_indices = @transform_4, window_bounds = array<i64: 1, 32>}, {transform_indices = @transform_5, window_bounds = array<i64: 1, 8, 32>}]} {
    %c0 = arith.constant 0 : index
    %c0_0 = arith.constant 0 : index
    %c0_1 = arith.constant 0 : index
    %0 = vector.load %arg2[%c0, %c0_0, %c0_1] : memref<1x8x32xbf16, #tpu.memory_space<vmem>>, vector<1x8x32xbf16>
    %1 = vector.shape_cast %0 : vector<1x8x32xbf16> to vector<8x32xbf16>
    %c0_2 = arith.constant 0 : index
    %c0_3 = arith.constant 0 : index
    %2 = vector.load %arg5[%c0_2, %c0_3] : memref<32x32xbf16, #tpu.memory_space<vmem>>, vector<32x32xbf16>
    %cst = arith.constant dense<0.000000e+00> : vector<8x32xf32>
    %3 = tpu.matmul %1, %2, %cst {dimension_numbers = #tpu.dot_dimension_numbers<[1], [0], [0], [1], [0, 0, 1, 1], [], []>} : vector<8x32xbf16>, vector<32x32xbf16>, vector<8x32xf32> -> vector<8x32xf32>
    %c0_4 = arith.constant 0 : index
    %c0_5 = arith.constant 0 : index
    %4 = vector.load %arg6[%c0_4, %c0_5] : memref<1x32xf32, #tpu.memory_space<vmem>>, vector<1x32xf32>
    %5 = vector.broadcast %4 : vector<1x32xf32> to vector<8x32xf32>
    %6 = arith.addf %3, %5 : vector<8x32xf32>
    %7 = arith.truncf %6 : vector<8x32xf32> to vector<8x32xbf16>
    %8 = vector.extract_strided_slice %7 {offsets = [0, 0], sizes = [8, 16], strides = [1, 1]} : vector<8x32xbf16> to vector<8x16xbf16>
    %c0_6 = arith.constant 0 : index
    %c0_7 = arith.constant 0 : index
    %c0_8 = arith.constant 0 : index
    %c0_9 = arith.constant 0 : index
    %9 = vector.load %arg3[%c0_6, %c0_7, %c0_8, %c0_9] : memref<1x2x16x8xbf16, #tpu.memory_space<vmem>>, vector<1x1x16x8xbf16>
    %10 = vector.shape_cast %9 : vector<1x1x16x8xbf16> to vector<16x8xbf16>
    %cst_10 = arith.constant dense<0.000000e+00> : vector<8x8xf32>
    %11 = tpu.matmul %8, %10, %cst_10 {dimension_numbers = #tpu.dot_dimension_numbers<[1], [0], [0], [1], [0, 0, 1, 1], [], []>} : vector<8x16xbf16>, vector<16x8xbf16>, vector<8x8xf32> -> vector<8x8xf32>
    %cst_11 = arith.constant dense<0xFF800000> : vector<8xf32>
    %12 = vector.multi_reduction <maximumf>, %11, %cst_11 [1] : vector<8x8xf32> to vector<8xf32>
    %13 = vector.shape_cast %12 : vector<8xf32> to vector<8x1xf32>
    %14 = vector.broadcast %13 : vector<8x1xf32> to vector<8x8xf32>
    %15 = arith.subf %11, %14 : vector<8x8xf32>
    %16 = math.exp %15 : vector<8x8xf32>
    %cst_12 = arith.constant dense<0.000000e+00> : vector<8xf32>
    %17 = vector.multi_reduction <add>, %16, %cst_12 [1] : vector<8x8xf32> to vector<8xf32>
    %18 = vector.shape_cast %17 : vector<8xf32> to vector<8x1xf32>
    %19 = tpu.reciprocal %18 {approx = true} : vector<8x1xf32> -> vector<8x1xf32>
    %20 = vector.broadcast %19 : vector<8x1xf32> to vector<8x8xf32>
    %21 = arith.mulf %16, %20 : vector<8x8xf32>
    %22 = arith.truncf %21 : vector<8x8xf32> to vector<8x8xbf16>
    %c0_13 = arith.constant 0 : index
    %c0_14 = arith.constant 0 : index
    %c0_15 = arith.constant 0 : index
    %c0_16 = arith.constant 0 : index
    %23 = vector.load %arg4[%c0_13, %c0_14, %c0_15, %c0_16] : memref<1x2x8x16xbf16, #tpu.memory_space<vmem>>, vector<1x1x8x16xbf16>
    %24 = vector.shape_cast %23 : vector<1x1x8x16xbf16> to vector<8x16xbf16>
    %cst_17 = arith.constant dense<0.000000e+00> : vector<8x16xf32>
    %25 = tpu.matmul %22, %24, %cst_17 {dimension_numbers = #tpu.dot_dimension_numbers<[1], [0], [0], [1], [0, 0, 1, 1], [], []>} : vector<8x8xbf16>, vector<8x16xbf16>, vector<8x16xf32> -> vector<8x16xf32>
    %c0_18 = arith.constant 0 : index
    %c0_19 = arith.constant 0 : index
    %26 = vector.load %arg8[%c0_18, %c0_19] : memref<8x32xf32, #tpu.memory_space<vmem>>, vector<8x16xf32>
    tpu.vector_store %arg8[%c0_18, %c0_19], %25 {strides = array<i32>} : memref<8x32xf32, #tpu.memory_space<vmem>>, vector<8x16xf32>,
    %27 = vector.extract_strided_slice %7 {offsets = [0, 16], sizes = [8, 16], strides = [1, 1]} : vector<8x32xbf16> to vector<8x16xbf16>
    %c0_20 = arith.constant 0 : index
    %c1 = arith.constant 1 : index
    %c0_21 = arith.constant 0 : index
    %c0_22 = arith.constant 0 : index
    %28 = vector.load %arg3[%c0_20, %c1, %c0_21, %c0_22] : memref<1x2x16x8xbf16, #tpu.memory_space<vmem>>, vector<1x1x16x8xbf16>
    %29 = vector.shape_cast %28 : vector<1x1x16x8xbf16> to vector<16x8xbf16>
    %cst_23 = arith.constant dense<0.000000e+00> : vector<8x8xf32>
    %30 = tpu.matmul %27, %29, %cst_23 {dimension_numbers = #tpu.dot_dimension_numbers<[1], [0], [0], [1], [0, 0, 1, 1], [], []>} : vector<8x16xbf16>, vector<16x8xbf16>, vector<8x8xf32> -> vector<8x8xf32>
    %cst_24 = arith.constant dense<0xFF800000> : vector<8xf32>
    %31 = vector.multi_reduction <maximumf>, %30, %cst_24 [1] : vector<8x8xf32> to vector<8xf32>
    %32 = vector.shape_cast %31 : vector<8xf32> to vector<8x1xf32>
    %33 = vector.broadcast %32 : vector<8x1xf32> to vector<8x8xf32>
    %34 = arith.subf %30, %33 : vector<8x8xf32>
    %35 = math.exp %34 : vector<8x8xf32>
    %cst_25 = arith.constant dense<0.000000e+00> : vector<8xf32>
    %36 = vector.multi_reduction <add>, %35, %cst_25 [1] : vector<8x8xf32> to vector<8xf32>
    %37 = vector.shape_cast %36 : vector<8xf32> to vector<8x1xf32>
    %38 = tpu.reciprocal %37 {approx = true} : vector<8x1xf32> -> vector<8x1xf32>
    %39 = vector.broadcast %38 : vector<8x1xf32> to vector<8x8xf32>
    %40 = arith.mulf %35, %39 : vector<8x8xf32>
    %41 = arith.truncf %40 : vector<8x8xf32> to vector<8x8xbf16>
    %c0_26 = arith.constant 0 : index
    %c1_27 = arith.constant 1 : index
    %c0_28 = arith.constant 0 : index
    %c0_29 = arith.constant 0 : index
    %42 = vector.load %arg4[%c0_26, %c1_27, %c0_28, %c0_29] : memref<1x2x8x16xbf16, #tpu.memory_space<vmem>>, vector<1x1x8x16xbf16>
    %43 = vector.shape_cast %42 : vector<1x1x8x16xbf16> to vector<8x16xbf16>
    %cst_30 = arith.constant dense<0.000000e+00> : vector<8x16xf32>
    %44 = tpu.matmul %41, %43, %cst_30 {dimension_numbers = #tpu.dot_dimension_numbers<[1], [0], [0], [1], [0, 0, 1, 1], [], []>} : vector<8x8xbf16>, vector<8x16xbf16>, vector<8x16xf32> -> vector<8x16xf32>
    %c0_31 = arith.constant 0 : index
    %c16 = arith.constant 16 : index
    %45 = vector.load %arg8[%c0_31, %c16] : memref<8x32xf32, #tpu.memory_space<vmem>>, vector<8x16xf32>
    tpu.vector_store %arg8[%c0_31, %c16], %44 {strides = array<i32>} : memref<8x32xf32, #tpu.memory_space<vmem>>, vector<8x16xf32>,
    %c0_32 = arith.constant 0 : index
    %c0_33 = arith.constant 0 : index
    %46 = vector.load %arg8[%c0_32, %c0_33] : memref<8x32xf32, #tpu.memory_space<vmem>>, vector<8x32xf32>
    %47 = math.tanh %46 : vector<8x32xf32>
    %c0_34 = arith.constant 0 : index
    %c0_35 = arith.constant 0 : index
    %c0_36 = arith.constant 0 : index
    %48 = vector.load %arg7[%c0_34, %c0_35, %c0_36] : memref<1x8x32xf32, #tpu.memory_space<vmem>>, vector<1x8x32xf32>
    %49 = vector.shape_cast %48 : vector<1x8x32xf32> to vector<8x32xf32>
    %50 = vector.shape_cast %47 : vector<8x32xf32> to vector<1x8x32xf32>
    tpu.vector_store %arg7[%c0_34, %c0_35, %c0_36], %50 {strides = array<i32>} : memref<1x8x32xf32, #tpu.memory_space<vmem>>, vector<1x8x32xf32>,
    return
  }
  func.func @transform_0(%arg0: i32, %arg1: i32) -> (i32, i32, i32) {
    %c0_i32 = arith.constant 0 : i32
    %c0_i32_0 = arith.constant 0 : i32
    return %arg0, %arg1, %c0_i32 : i32, i32, i32
  }
  func.func @transform_1(%arg0: i32, %arg1: i32) -> (i32, i32, i32, i32) {
    %c0_i32 = arith.constant 0 : i32
    %c0_i32_0 = arith.constant 0 : i32
    %c0_i32_1 = arith.constant 0 : i32
    %c0_i32_2 = arith.constant 0 : i32
    return %arg0, %c0_i32, %c0_i32_0, %c0_i32_1 : i32, i32, i32, i32
  }
  func.func @transform_2(%arg0: i32, %arg1: i32) -> (i32, i32, i32, i32) {
    %c0_i32 = arith.constant 0 : i32
    %c0_i32_0 = arith.constant 0 : i32
    %c0_i32_1 = arith.constant 0 : i32
    %c0_i32_2 = arith.constant 0 : i32
    return %arg0, %c0_i32, %c0_i32_0, %c0_i32_1 : i32, i32, i32, i32
  }
  func.func @transform_3(%arg0: i32, %arg1: i32) -> (i32, i32) {
    %c0_i32 = arith.constant 0 : i32
    %c0_i32_0 = arith.constant 0 : i32
    %c0_i32_1 = arith.constant 0 : i32
    return %c0_i32, %c0_i32_0 : i32, i32
  }
  func.func @transform_4(%arg0: i32, %arg1: i32) -> (i32, i32) {
    %c0_i32 = arith.constant 0 : i32
    %c0_i32_0 = arith.constant 0 : i32
    %c0_i32_1 = arith.constant 0 : i32
    return %c0_i32, %c0_i32_0 : i32, i32
  }
  func.func @transform_5(%arg0: i32, %arg1: i32) -> (i32, i32, i32) {
    %c0_i32 = arith.constant 0 : i32
    %c0_i32_0 = arith.constant 0 : i32
    return %arg0, %arg1, %c0_i32 : i32, i32, i32
  }
}

</mosaic_0001>

<bundles_post_ra>
// kernel: tpu_custom_call.1
= control target key start
LH: loop header
LB: loop body
LE: loop exit
PB: predicated region body
PF: predicated region fallthrough
CT: control target
= control target key end

     0   :  { %10 = vsyncpa [#allocation4], 0  ;;  %s1125_s0 = inlined_call_operand.vmem [shape: bf16[2,8,32], index: 0, kind: input, shape index: {}]   ;;  %s1126_s1 = inlined_call_operand.vmem [shape: bf16[2,2,16,8], index: 1, kind: input, shape index: {}]   ;;  %s1127_s2 = inlined_call_operand.vmem [shape: bf16[2,2,8,16], index: 2, kind: input, shape index: {}]   ;;  %s1128_s3 = inlined_call_operand.vmem [shape: bf16[32,32], index: 3, kind: input, shape index: {}]   ;;  %s1129_s4 = inlined_call_operand.vmem [shape: f32[1,32], index: 4, kind: input, shape index: {}]   ;;  %s1130_s5 = inlined_call_operand.hbm [shape: f32[2,8,32], index: 5, kind: output, shape index: {}]  }
   0x1   :  { %12 = vsyncpa [#allocation4 + $0x1], 0  ;;  %s964_s18 = smov 0   ;;  %s966_s19 = smov 0  }
   0x2   :  { %s968_s20 = smov 0   ;;  %s970_s21 = smov 0  }
   0x3   :  { %s972_s22 = smov 0   ;;  %s974_s23 = smov 0  }
   0x4 LB: > { %s703_s24 = sadd.s32 4294967295, %s927_s23   ;;  %s704_s25 = sadd.s32 4294967294, %s927_s23   ;;  %s927_s23 = sphi %s974_s23, %s18_s23   ;;  %s923_s22 = sphi %s972_s22, %s1137_s22   ;;  %s919_s21 = sphi %s970_s21, %s1136_s21   ;;  %s915_s20 = sphi %s968_s20, %s1135_s20   ;;  %s911_s19 = sphi %s966_s19, %s1134_s19   ;;  %s907_s18 = sphi %s964_s18, %s1133_s18  }
   0x5   : > { %s30_s26 = sadd.s32 1, %s923_s22  ;;  %s161_s27 = sadd.s32 1, %s915_s20 }
   0x6   : > { %p32_p0 = scmp.ge.s32.totalorder %s30_s26, 2  ;;  %p171_p1 = scmp.ne.s32.totalorder %s915_s20, %s911_s19 }
   0x7   : > { %p172_p2 = scmp.eq.s32.totalorder %s703_s24, 1  ;;  %p177_p3 = scmp.ne.s32.totalorder %s911_s19, %s907_s18 }
   0x8   : > { %s1139_s26 = smov (%p32_p0, %s30_s26), 0  ;;  %p178_p5 = scmp.eq.s32.totalorder %s704_s25, 1 }
   0x9   : > { %p1004_p4 = por %p172_p2, %p171_p1  ;;  %s156_s29 = ssub.s32 %s923_s22, %s1139_s26 }
   0xa   : > { %p707_p6 = scmp.ge.s32.totalorder %s927_s23, 1  ;;  %p159_p7 = scmp.eq.s32.totalorder %s156_s29, 0 }
   0xb   : > { %p1011_p8 = por %p178_p5, %p177_p3  ;;  %p228_p9 = scmp.lt.s32.totalorder %s927_s23, 3 }
   0xc   : > { %s1017_s6 = scalar_select %p159_p7, %s915_s20, %s161_s27  }
   0xd   : > { %p229_p10 = pnand %p707_p6, %p228_p9 }
   0xe   : > { %v835_v0 = vld [vmem:[%s1128_s3] sm:$0xff] (!%p229_p10)   ;;  %v929_v1 = vmov (!%p229_p10), 0.0   ;;  %v836_v2 = vld [vmem:[%s1128_s3 + $0x8] sm:$0xff] (!%p229_p10)   ;;  %vm930_vm0 = vmmov (!%p229_p10), 0   ;;  %p268_p11 = scmp.lt.s32.totalorder (!%p229_p10), %s919_s21, 1  ;;  %vm310_vm1 = vcmask (!%p229_p10), 261120  }
   0xf   : > { %232 = sbr.rel (%p229_p10) target bundleno = 1246 (0x4de), region = 40  ;;  %744 = vmatprep.subr.bf16.mxu0 (!%p229_p10), %v929_v1  ;;  %752 = vmatprep.subr.bf16.mxu1 (!%p229_p10), %v929_v1  ;;  %v714_v6 = vld [vmem:[%s1129_s4] ss:$0 sm:$0xff] (!%p229_p10)  ;;  %vm363_vm2 = vcmask (!%p229_p10), 130048   ;;  %s931_s7 = smov (!%p229_p10), 112   ;;  %vm407_vm3 = vcmask (!%p229_p10), 64512  }
  0x10   : > { %745 = vmatpush3.bf16.msra.mxu0 (!%p229_p10), %v835_v0  ;;  %748 = vmatprep.mubr.msk.bf16.mxu0 (!%p229_p10), %vm930_vm0, %v929_v1  ;;  %vm424_vm4 = vcmask (!%p229_p10), 1043456   ;;  %vm588_vm5 = vcmask (!%p229_p10), 261248   ;;  %s265_s13 = sand.u32 (!%p229_p10), 1, %s911_s19  }
  0x11   : > { %746 = vmatprep.subr.bf16.mxu0 (!%p229_p10), %v929_v1  ;;  %754 = vmatprep.mubr.msk.bf16.mxu1 (!%p229_p10), %vm930_vm0, %v929_v1  ;;  %s708_s14 = sshll.u32 (!%p229_p10), %s265_s13, 3  ;;  %s594_s29 = scalar_lea.sflag (!%p229_p10), [#allocation4], %s265_s13 }
  0x14   : > { %747 = vmatpush3.bf16.msra.mxu0 (!%p229_p10), %v836_v2 }
  0x15   : > { %764 = vmatprep.subr.bf16.mxu0 (!%p229_p10), %v929_v1 }
  0x16   : > { %s1034_s11 = scalar_select %p268_p11, %s919_s21, 1 }
  0x18   : > { %s709_s12 = sshll.u32 %s1034_s11, 2  ;;  %s731_s16 = sshll.u32 %s1034_s11, 4 }
  0x19   : > { %s274_s15 = scalar_lea.vmem %s1125_s0, %s709_s12  ;;  %s279_s25 = scalar_lea.vmem %s1126_s1, %s731_s16 }
  0x1a   : > { %v286_v3 = vld [vmem:[%s274_s15] sm:$0xf]  ;;  %v838_v5 = vld [vmem:[%s279_s25 + $0x8] sm:$0xff]   ;;  %s732_s8 = sshll.u32 %s1034_s11, 3  ;;  %s932_s11 = smov 16  }
  0x1b   : > { %749 = vmatmul.mubr.msk.bf16.vlgmr.msra.gmra.mrb[0].mxu0 %vm310_vm1, %v286_v3  ;;  %v837_v4 = vld [vmem:[%s279_s25] sm:$0xff]   ;;  %s284_s12 = scalar_lea.vmem %s1127_s2, %s732_s8  ;;  %s728_s15 = sshll.u32 %s919_s21, 7 }
  0x1c   : > { %766 = vmatprep.mubr.msk.bf16.mxu0 %vm930_vm0, %v929_v1  ;;  %753 = vmatpush3.bf16.msra.mxu1 %v837_v4  ;;  %v420_v29 = vld [vmem:[%s284_s12] sm:$0xf]  ;;  %v725_v38 = vld [vmem:[%s284_s12 + $0x4] sm:$0xf]  ;;  %s267_s16 = scalar_lea.vmem [#allocation3], %s708_s14  ;;  %s1077_s27 = scalar_lea.hbm %s1130_s5, %s728_s15 }
  0x1d   : > { %758 = vmatprep.subr.bf16.mxu1 %v929_v1  ;;  %765 = vmatpush3.bf16.msra.mxu0 %v838_v5  ;;  %v426_v30 = vsel %vm424_vm4, %v420_v29, 0  ;;  %v542_v41 = vsel %vm424_vm4, %v725_v38, 0  ;;  %s608_s17 = sshll.u32 %s267_s16, 4  ;;  %s933_s21 = smov [#allocation3]   ;;  %s1079_s17 = int_to_ptr.vmem [resolvable:$true] %s608_s17 }
  0x1e   : > { %s853_s8 = sshll.u32 %s933_s21, 4  ;;  %s854_s8 = int_to_ptr.vmem [resolvable:$false] %s853_s8 }
  0x1f   : > { %s855_s9 = scalar_lea.vmem %s854_s8, 256  ;;  %p856_p1 = scmp.lt.s32.totalorder %s1079_s17, %s854_s8 }
  0xee   : > { %v348_v7 = vpop.f32.mrb[0].mxu0 }
  0xef   : > { %v349_v8 = vadd.f32 %v714_v6, %v348_v7  ;;  %v750_v9 = vpop.f32.mrb[1].mxu0 }
  0xf0   : > { %v351_v10 = vpop.f32.mrb[2].mxu0 }
  0xf1   : > { %v354_v11 = vpack.c.bf16 %v349_v8, %v349_v8  ;;  %v751_v12 = vpop.f32.mrb[3].mxu0 }
  0xf3   : > { %473 = vrot.lane.b32.xlu0 %v354_v11, %s931_s7  ;;  %755 = vmatmul.mubr.msk.bf16.vlgmr.msra.gmra.mrb[0].mxu1 %vm363_vm2, %v354_v11  ;;  %s849_s7 = scalar_lea.vmem %s1079_s17, 128 }
  0xf4   : > { %760 = vmatprep.mubr.msk.bf16.mxu1 %vm930_vm0, %v929_v1  ;;  %759 = vmatpush3.bf16.msra.mxu1 %v426_v30  ;;  %p850_p12 = scmp.ne.s32.totalorder %s1079_s17, %s849_s7  ;;  %p857_p2 = scmp.lt.s32.totalorder %s855_s9, %s849_s7 }
  0xf5   : > { %770 = vmatprep.subr.bf16.mxu1 %v929_v1 }
  0xf6   : > { %p851_p13 = pnand %p850_p12, %p1004_p4  ;;  %p858_p3 = por %p857_p2, %p856_p1 }
  0xf8   : > { %p852_p0 = pneg %p851_p13 }
  0xfa   : > { %p859_p5 = pnand %p858_p3, %p852_p0 }
 0x165   : > { %v474_v13 = vpop.permute.xlu0 %473 }
 0x166   : > { %767 = vmatmul.mubr.msk.bf16.vlgmr.msra.gmra.mrb[4].mxu0 %vm363_vm2, %v474_v13 }
 0x1c6   : > { %v401_v14 = vpop.f32.mrb[0].mxu1 }
 0x1c7   : > { %v756_v15 = vpop.f32.mrb[1].mxu1  ;;  %v408_v16 = vsel %vm407_vm3, %v401_v14, -inf }
 0x1c8   : > { %409 = vmax.xlane.f32.xlu0 %v408_v16  ;;  %v404_v17 = vpop.f32.mrb[2].mxu1 }
 0x1c9   : > { %v757_v18 = vpop.f32.mrb[3].mxu1 }
 0x239   : > { %v518_v19 = vpop.f32.mrb[4].mxu0 }
 0x23a   : > { %v768_v20 = vpop.f32.mrb[5].mxu0  ;;  %v524_v21 = vsel %vm407_vm3, %v518_v19, -inf }
 0x23b   : > { %525 = vmax.xlane.f32.xlu1 %v524_v21  ;;  %v521_v22 = vpop.f32.mrb[6].mxu0 }
 0x23c   : > { %v769_v23 = vpop.f32.mrb[7].mxu0 }
 0x255   : > { %v410_v24 = vpop.xlane.xlu0 %409 }
 0x256   : > { %v411_v25 = vsub.f32 %v401_v14, %v410_v24 }
 0x258   : > { %v412_v26 = vmul.f32 1.442695, %v411_v25 }
 0x25a   : > { %839 = vpow2.f32 %v412_v26 }
 0x264   : > { %v840_v27 = vpop.eup %839 }
 0x265   : > { %v414_v28 = vsel %vm407_vm3, %v840_v27, 0.0 }
 0x266   : > { %415 = vadd.xlane.f32.xlu1 %v414_v28 }
 0x2c8   : > { %v526_v31 = vpop.xlane.xlu1 %525 }
 0x2c9   : > { %v527_v32 = vsub.f32 %v518_v19, %v526_v31 }
 0x2cb   : > { %v528_v33 = vmul.f32 1.442695, %v527_v32 }
 0x2cd   : > { %841 = vpow2.f32 %v528_v33 }
 0x2d7   : > { %v842_v34 = vpop.eup %841 }
 0x2d8   : > { %v530_v35 = vsel %vm407_vm3, %v842_v34, 0.0 }
 0x2d9   : > { %531 = vadd.xlane.f32.xlu1 %v530_v35 }
 0x2f3   : > { %v416_v36 = vpop.xlane.xlu1 %415 }
 0x2f4   : > { %843 = vrcp.f32 %v416_v36 }
 0x2fe   : > { %v844_v37 = vpop.eup %843 }
 0x2ff   : > { %v418_v39 = vmul.f32 %v844_v37, %v840_v27 }
 0x301   : > { %v419_v40 = vpack.c.bf16 %v418_v39, %v418_v39 }
 0x303   : > { %761 = vmatmul.mubr.msk.bf16.vlgmr.msra.gmra.mrb[4].mxu1 %vm407_vm3, %v419_v40 }
 0x304   : > { %771 = vmatpush3.bf16.msra.mxu1 %v542_v41  ;;  %772 = vmatprep.mubr.msk.bf16.mxu1 %vm930_vm0, %v929_v1 }
 0x366   : > { %v532_v42 = vpop.xlane.xlu1 %531 }
 0x367   : > { %845 = vrcp.f32 %v532_v42 }
 0x371   : > { %v846_v43 = vpop.eup %845 }
 0x372   : > { %v534_v44 = vmul.f32 %v846_v43, %v842_v34 }
 0x374   : > { %v535_v45 = vpack.c.bf16 %v534_v44, %v534_v44 }
 0x376   : > { %773 = vmatmul.mubr.msk.bf16.vlgmr.msra.gmra.mrb[8].mxu1 %vm407_vm3, %v535_v45 }
 0x3d6   : > { %v462_v46 = vpop.f32.mrb[4].mxu1 }
 0x3d7   : > { %468 = vst.msk [vmem:[#allocation2] sm:$0xff] %vm363_vm2, %v462_v46  ;;  %v762_v47 = vpop.f32.mrb[5].mxu1 }
 0x3d8   : > { %v465_v48 = vpop.f32.mrb[6].mxu1 }
 0x3d9   : > { %v763_v49 = vpop.f32.mrb[7].mxu1 }
 0x449   : > { %v578_v50 = vpop.f32.mrb[8].mxu1 }
 0x44a   : > { %585 = vrot.lane.b32.xlu1 %v578_v50, %s932_s11  ;;  %v774_v51 = vpop.f32.mrb[9].mxu1 }
 0x44b   : > { %v581_v52 = vpop.f32.mrb[10].mxu1 }
 0x44c   : > { %v775_v53 = vpop.f32.mrb[11].mxu1 }
 0x4bc   : > { %v586_v54 = vpop.permute.xlu1 %585 }
 0x4bd   : > { %589 = vst.msk [vmem:[#allocation2] sm:$0xff] %vm588_vm5, %v586_v54 }
 0x4c4   : > { %v590_v55 = vld [vmem:[#allocation2] sm:$0xff] }
 0x4c5   : > { %847 = vtanh.f32 %v590_v55 }
 0x4cf   : > { %v848_v56 = vpop.eup %847 }
 0x4d0   : > { %592 = vst.msk [vmem:[%s267_s16] sm:$0xff] %vm310_vm1, %v848_v56 }
 0x4d1   : > { %862 = shalt.err (!%p859_p5)
}
 0x4d2   : > { %s863_s10 = scalar_lea.hbm %s1077_s27, 128  ;;  %s867_s13 = scalar_lea.hbm %s1130_s5, 256 }
 0x4d3   : > { %p864_p6 = scmp.ne.s32.totalorder %s1077_s27, %s863_s10  ;;  %p868_p10 = scmp.lt.u32.totalorder %s1077_s27, %s1130_s5 }
 0x4d4   : > { %p869_p11 = scmp.lt.u32.totalorder %s867_s13, %s863_s10  ;;  %p871_p13 = scmp.lt.u32.totalorder %s863_s10, %s1077_s27 }
 0x4d5   : > { %p865_p7 = pnand %p864_p6, %p1004_p4 }
 0x4d6   : > { %p870_p12 = por %p869_p11, %p868_p10 }
 0x4d7   : > { %p866_p9 = pneg %p865_p7 }
 0x4d8   : > { %p872_p0 = por %p871_p13, %p870_p12 }
 0x4da   : > { %p873_p1 = pnand %p872_p0, %p866_p9 }
 0x4dc   : > { %876 = shalt.err (!%p873_p1)
}
 0x4dd   : > { %776 = dma.vmem_to_hbm [thread:$0]  (%p1004_p4), %s1079_s17, 128, %s1077_s27, %s594_s29  }
 0x4de PF: > { %p782_p2 = scmp.ge.s32.totalorder %s927_s23, 2  ;;  %s620_s16 = sand.u32 1, %s907_s18  }
 0x4df   : > { %s621_s24 = scalar_lea.sflag [#allocation4], %s620_s16 }
 0x4e0   : > { %p779_p3 = pnand %p782_p2, %p1011_p8 }
 0x4e2   : > { %902 = dma.done.wait (!%p779_p3), %s621_s24, 128  }
 0x4e3   : > { %904 = vsyncadd (!%p779_p3), %s621_s24, 4294967168  ;;  %s18_s23 = sadd.s32 1, %s927_s23   ;;  %s1133_s18 = smov %s911_s19 }
 0x4e4   : > { %p15_p5 = scmp.ge.s32.totalorder %s18_s23, 4   ;;  %s1134_s19 = smov %s915_s20 }
 0x4e5   : > { %s1135_s20 = smov %s1017_s6  ;;  %s1136_s21 = smov %s923_s22 }
 0x4e6   : > { %s1137_s22 = smov %s1139_s26  ;;  %17 = sbr.rel (!%p15_p5) target bundleno = 4 (0x4), region = 83 }
 0x4ed   :  { %626 = vsyncpa [#allocation4], 1 }
 0x4ee   :  { %628 = vsyncpa [#allocation4 + $0x1], 1 }

</bundles_post_ra>
